<compile_context>
chip_gen: v6e
topology: v6e:2x2x1
jax: 0.10.0
libtpu: 0.0.40
codegen_flags: <defaults>
</compile_context>

<pallas_src>
import functools

import numpy as np

import jax
import jax.numpy as jnp
from jax import lax
from jax.experimental import pallas as pl
from jax.experimental.pallas import tpu as pltpu


def fireblock_kernel(x_ref, wsq_ref, bsq_ref, wbig_ref, bfuse_ref, mask_ref,
                     out_ref, *, W):
    """One grid step = one image, H*W pixels flattened on the lane axis.

    x_ref     : (C_in, T) f32    input image tile, T = H*W
    wsq_ref   : (3, C_in) bf16   squeeze 1x1 weight
    bsq_ref   : (3, 1)    f32    squeeze bias
    wbig_ref  : (3, 24, 3) bf16  fused tower weights; axis 0 = dy in {-1,0,+1};
                                 rows [0:6]/[8:14]/[16:22] are the dx=-1/0/+1
                                 blocks; inside each 6-row block rows 0..2 =
                                 tower_one (center tap only), rows 3..5 =
                                 tower_two tap (dy, dx).
    bfuse_ref : (6, 1)    f32    concat(b1, b2)
    mask_ref  : (4, T)    f32    {0,1} masks: row_up, row_down, col_left,
                                 col_right (image-boundary validity)
    out_ref   : (6, T)    f32    concat([tower_one, tower_two])
    """
    T = x_ref.shape[1]

    # ---- squeeze: 1x1 conv == channel matmul (bf16 MXU, f32 acc) + ReLU ----
    x_bf = x_ref[...].astype(jnp.bfloat16)
    sq = jnp.dot(wsq_ref[...], x_bf, preferred_element_type=jnp.float32)
    sq = jnp.maximum(sq + bsq_ref[...], 0.0)                       # (3, T) f32

    m = mask_ref[...]
    m_up, m_down = m[0:1], m[1:2]
    m_cl, m_cr = m[2:3], m[3:4]

    # ---- vertical (dy) taps: rolled rows; wraparound nulled by row masks ----
    sq_bf = sq.astype(jnp.bfloat16)
    up_bf = (pltpu.roll(sq, shift=W, axis=1) * m_up).astype(jnp.bfloat16)
    down_bf = (pltpu.roll(sq, shift=T - W, axis=1) * m_down).astype(jnp.bfloat16)

    # ---- fused towers: one (24,3)x(3,T) bf16 matmul per dy, f32 acc ----
    wb = wbig_ref[...]
    pre = (jnp.dot(wb[0], up_bf, preferred_element_type=jnp.float32)
           + jnp.dot(wb[1], sq_bf, preferred_element_type=jnp.float32)
           + jnp.dot(wb[2], down_bf, preferred_element_type=jnp.float32))

    left = pre[0:6]      # dx = -1 contributions (pre-shift)
    mid = pre[8:14]      # dx =  0 (tower_one rides here)
    right = pre[16:22]   # dx = +1 contributions (pre-shift)

    # ---- horizontal (dx) taps: 1-lane rolls + column masks ----
    acc = (mid
           + pltpu.roll(left, shift=1, axis=1) * m_cl
           + pltpu.roll(right, shift=T - 1, axis=1) * m_cr)

    # bias + ReLU; single full-block aligned store (no concatenate).
    out_ref[...] = jnp.maximum(acc + bfuse_ref[...], 0.0)


def fireblock_forward(x_nchw, params):
    """x_nchw: (N, C_in, H, W) float32 -> (N, 6, H, W) float32."""
    N, C_in, H, W = x_nchw.shape
    HW = H * W

    # Free, contiguous reshape (no HBM round trip, unlike a transpose).
    x3d = x_nchw.reshape(N, C_in, HW)

    wsq = params["wsq"].reshape(3, C_in).astype(jnp.bfloat16)
    bsq = params["bsq"].reshape(3, 1).astype(jnp.float32)
    w1 = params["w1"].reshape(3, 3).astype(jnp.float32)           # (co, ci)
    b1 = params["b1"].reshape(3).astype(jnp.float32)
    w2 = params["w2"].astype(jnp.float32)                         # (co, ci, kh, kw)
    b2 = params["b2"].reshape(3).astype(jnp.float32)

    # Fused tower weight: per dy a (24, 3) matrix with three 8-row-aligned
    # 6-row blocks (dx = -1, 0, +1); rows 0..2 = tower_one (center tap only),
    # rows 3..5 = tower_two tap (dy, dx).  Padding rows stay zero.  bf16.
    wbig = jnp.zeros((3, 24, 3), jnp.float32)
    for di, dy in enumerate((-1, 0, 1)):
        for bi, dx in enumerate((-1, 0, 1)):
            r = 8 * bi
            if dy == 0 and dx == 0:
                wbig = wbig.at[di, r:r + 3, :].set(w1)
            wbig = wbig.at[di, r + 3:r + 6, :].set(w2[:, :, dy + 1, dx + 1])
    wbig = wbig.astype(jnp.bfloat16)
    bfuse = jnp.concatenate([b1, b2]).reshape(6, 1)

    # Image-boundary masks -- identical for every grid step (one image/step);
    # built host-side once (H, W static) and kept VMEM-resident by the
    # constant index_map.
    pos = np.arange(HW, dtype=np.int64)
    hh, ww = pos // W, pos % W
    masks = jnp.asarray(
        np.stack([hh >= 1, hh <= H - 2, ww >= 1, ww <= W - 2]).astype(np.float32))

    kernel = functools.partial(fireblock_kernel, W=W)

    flops = 2 * N * HW * (3 * C_in + 3 * 3 + 3 * 27)
    bytes_accessed = (N * HW * C_in * 4 + N * HW * 6 * 4 + 4 * HW * 4
                      + 3 * C_in * 2 + 3 * 24 * 3 * 2 + (3 + 6) * 4)

    # ~300 B/lane of live intermediates + double-buffered I/O blocks; clamp
    # between v5e's 16 MiB scoped default and v7x's 64 MiB physical VMEM.
    vmem_limit = int(min(max(512 * HW + (2 << 20), 16 << 20), 64 << 20))

    out3d = pl.pallas_call(
        kernel,
        out_shape=jax.ShapeDtypeStruct((N, 6, HW), jnp.float32),
        grid=(N,),
        in_specs=[
            pl.BlockSpec((pl.Squeezed(), C_in, HW), lambda i: (i, 0, 0)),
            pl.BlockSpec((3, C_in), lambda i: (0, 0)),
            pl.BlockSpec((3, 1), lambda i: (0, 0)),
            pl.BlockSpec((3, 24, 3), lambda i: (0, 0, 0)),
            pl.BlockSpec((6, 1), lambda i: (0, 0)),
            pl.BlockSpec((4, HW), lambda i: (0, 0)),
        ],
        out_specs=pl.BlockSpec((pl.Squeezed(), 6, HW), lambda i: (i, 0, 0)),
        compiler_params=pltpu.CompilerParams(
            dimension_semantics=("parallel",),
            vmem_limit_bytes=vmem_limit,
        ),
        cost_estimate=pl.CostEstimate(flops=flops, transcendentals=0,
                                      bytes_accessed=bytes_accessed),
    )(x3d, wsq, bsq, wbig, bfuse, masks)

    return out3d.reshape(N, 6, H, W)


def init_params(key, C_in):
    """Deterministic init matching nn.Conv2d default (U(-1/sqrt(fan_in), +...))."""
    ks = jax.random.split(key, 6)

    def u(k, shape, fan_in):
        bound = 1.0 / jnp.sqrt(fan_in)
        return jax.random.uniform(k, shape, jnp.float32, -bound, bound)

    return {
        "wsq": u(ks[0], (3, C_in, 1, 1), C_in * 1 * 1),
        "bsq": u(ks[1], (3,), C_in * 1 * 1),
        "w1": u(ks[2], (3, 3, 1, 1), 3 * 1 * 1),
        "b1": u(ks[3], (3,), 3 * 1 * 1),
        "w2": u(ks[4], (3, 3, 3, 3), 3 * 3 * 3),
        "b2": u(ks[5], (3,), 3 * 3 * 3),
    }


def _conv(x, w, padding):
    return lax.conv_general_dilated(
        x, w, (1, 1), padding,
        dimension_numbers=("NCHW", "OIHW", "NCHW"),
        precision=lax.Precision.HIGHEST)


def reference_forward(x, params):
    """Pure-JAX f32 reference (NCHW), mirrors the PyTorch module exactly."""
    sq = _conv(x, params["wsq"], "VALID") + params["bsq"].reshape(1, 3, 1, 1)
    sq = jnp.maximum(sq, 0.0)
    t1 = _conv(sq, params["w1"], "VALID") + params["b1"].reshape(1, 3, 1, 1)
    t1 = jnp.maximum(t1, 0.0)
    t2 = _conv(sq, params["w2"], ((1, 1), (1, 1))) + params["b2"].reshape(1, 3, 1, 1)
    t2 = jnp.maximum(t2, 0.0)
    return jnp.concatenate([t1, t2], axis=1)


def _q(a):
    return a.astype(jnp.bfloat16).astype(jnp.float32)


def reference_forward_quantized(x, params):
    """Mirrors the kernel's numerics: bf16 matmul operands, f32 accumulation."""
    sq = _conv(_q(x), _q(params["wsq"]), "VALID") + params["bsq"].reshape(1, 3, 1, 1)
    sq = _q(jnp.maximum(sq, 0.0))
    t1 = _conv(sq, _q(params["w1"]), "VALID") + params["b1"].reshape(1, 3, 1, 1)
    t1 = jnp.maximum(t1, 0.0)
    t2 = _conv(sq, _q(params["w2"]), ((1, 1), (1, 1))) + params["b2"].reshape(1, 3, 1, 1)
    t2 = jnp.maximum(t2, 0.0)
    return jnp.concatenate([t1, t2], axis=1)


if __name__ == "__main__":
    key = jax.random.PRNGKey(0)
    k_x, k_p = jax.random.split(key)

    N, C_in, H, W = 2, 4, 16, 16
    x = jax.random.normal(k_x, (N, C_in, H, W), jnp.float32)
    params = init_params(k_p, C_in)

    fwd = jax.jit(fireblock_forward)
    out = jax.block_until_ready(fwd(x, params))
    assert out.shape == (N, 6, H, W)

    # Exact-path reference: quantizes to bf16 exactly where the kernel does,
    # so agreement is at f32-rounding level.
    ref_q = reference_forward_quantized(x, params)
    err_q = float(jnp.max(jnp.abs(out - ref_q)))
    assert err_q < 1e-3, err_q

    # Full-precision module reference: loose bound covering bf16 quantization.
    ref = reference_forward(x, params)
    err = float(jnp.max(jnp.abs(out - ref)))
    assert err < 1e-1, err

    print("KERNEL_OK")
</pallas_src>

<mosaic_0001>
module attributes {stable_mosaic.version = 11 : i64} {
  func.func @fireblock_kernel(%arg0: i32, %arg1: memref<1x4x256xf32, #tpu.memory_space<vmem>>, %arg2: memref<3x4xbf16, #tpu.memory_space<vmem>>, %arg3: memref<3x1xf32, #tpu.memory_space<vmem>>, %arg4: memref<3x24x3xbf16, #tpu.memory_space<vmem>>, %arg5: memref<6x1xf32, #tpu.memory_space<vmem>>, %arg6: memref<4x256xf32, #tpu.memory_space<vmem>>, %arg7: memref<1x6x256xf32, #tpu.memory_space<vmem>>) attributes {dimension_semantics = [#tpu.dimension_semantics<parallel>], iteration_bounds = array<i64: 2>, scalar_prefetch = 0 : i64, scratch_operands = 0 : i64, tpu.core_type = #tpu.core_type<tc>, window_params = [{transform_indices = @transform_0, window_bounds = array<i64: 1, 4, 256>}, {pipeline_mode = #tpu.pipeline_mode<synchronous>, transform_indices = @transform_1, window_bounds = array<i64: 3, 4>}, {pipeline_mode = #tpu.pipeline_mode<synchronous>, transform_indices = @transform_2, window_bounds = array<i64: 3, 1>}, {pipeline_mode = #tpu.pipeline_mode<synchronous>, transform_indices = @transform_3, window_bounds = array<i64: 3, 24, 3>}, {pipeline_mode = #tpu.pipeline_mode<synchronous>, transform_indices = @transform_4, window_bounds = array<i64: 6, 1>}, {pipeline_mode = #tpu.pipeline_mode<synchronous>, transform_indices = @transform_5, window_bounds = array<i64: 4, 256>}, {transform_indices = @transform_6, window_bounds = array<i64: 1, 6, 256>}]} {
    %c0 = arith.constant 0 : index
    %c0_0 = arith.constant 0 : index
    %c0_1 = arith.constant 0 : index
    %0 = vector.load %arg1[%c0, %c0_0, %c0_1] : memref<1x4x256xf32, #tpu.memory_space<vmem>>, vector<1x4x256xf32>
    %1 = vector.shape_cast %0 : vector<1x4x256xf32> to vector<4x256xf32>
    %2 = arith.truncf %1 : vector<4x256xf32> to vector<4x256xbf16>
    %c0_2 = arith.constant 0 : index
    %c0_3 = arith.constant 0 : index
    %3 = vector.load %arg2[%c0_2, %c0_3] : memref<3x4xbf16, #tpu.memory_space<vmem>>, vector<3x4xbf16>
    %cst = arith.constant dense<0.000000e+00> : vector<3x256xf32>
    %4 = tpu.matmul %3, %2, %cst {dimension_numbers = #tpu.dot_dimension_numbers<[1], [0], [0], [1], [0, 0, 1, 1], [], []>} : vector<3x4xbf16>, vector<4x256xbf16>, vector<3x256xf32> -> vector<3x256xf32>
    %c0_4 = arith.constant 0 : index
    %c0_5 = arith.constant 0 : index
    %5 = vector.load %arg3[%c0_4, %c0_5] : memref<3x1xf32, #tpu.memory_space<vmem>>, vector<3x1xf32>
    %6 = vector.broadcast %5 : vector<3x1xf32> to vector<3x256xf32>
    %7 = arith.addf %4, %6 : vector<3x256xf32>
    %cst_6 = arith.constant 0.000000e+00 : f32
    %8 = vector.broadcast %cst_6 : f32 to vector<3x256xf32>
    %9 = arith.maximumf %7, %8 : vector<3x256xf32>
    %c0_7 = arith.constant 0 : index
    %c0_8 = arith.constant 0 : index
    %10 = vector.load %arg6[%c0_7, %c0_8] : memref<4x256xf32, #tpu.memory_space<vmem>>, vector<4x256xf32>
    %11 = vector.extract_strided_slice %10 {offsets = [0, 0], sizes = [1, 256], strides = [1, 1]} : vector<4x256xf32> to vector<1x256xf32>
    %12 = vector.extract_strided_slice %10 {offsets = [1, 0], sizes = [1, 256], strides = [1, 1]} : vector<4x256xf32> to vector<1x256xf32>
    %13 = vector.extract_strided_slice %10 {offsets = [2, 0], sizes = [1, 256], strides = [1, 1]} : vector<4x256xf32> to vector<1x256xf32>
    %14 = vector.extract_strided_slice %10 {offsets = [3, 0], sizes = [1, 256], strides = [1, 1]} : vector<4x256xf32> to vector<1x256xf32>
    %15 = arith.truncf %9 : vector<3x256xf32> to vector<3x256xbf16>
    %c16_i32 = arith.constant 16 : i32
    %16 = tpu.dynamic_rotate %9 by %c16_i32 dim 1 : vector<3x256xf32>, i32 -> vector<3x256xf32>
    %17 = vector.broadcast %11 : vector<1x256xf32> to vector<3x256xf32>
    %18 = arith.mulf %16, %17 : vector<3x256xf32>
    %19 = arith.truncf %18 : vector<3x256xf32> to vector<3x256xbf16>
    %c240_i32 = arith.constant 240 : i32
    %20 = tpu.dynamic_rotate %9 by %c240_i32 dim 1 : vector<3x256xf32>, i32 -> vector<3x256xf32>
    %21 = vector.broadcast %12 : vector<1x256xf32> to vector<3x256xf32>
    %22 = arith.mulf %20, %21 : vector<3x256xf32>
    %23 = arith.truncf %22 : vector<3x256xf32> to vector<3x256xbf16>
    %c0_9 = arith.constant 0 : index
    %c0_10 = arith.constant 0 : index
    %c0_11 = arith.constant 0 : index
    %24 = vector.load %arg4[%c0_9, %c0_10, %c0_11] : memref<3x24x3xbf16, #tpu.memory_space<vmem>>, vector<3x24x3xbf16>
    %25 = vector.extract_strided_slice %24 {offsets = [0, 0, 0], sizes = [1, 24, 3], strides = [1, 1, 1]} : vector<3x24x3xbf16> to vector<1x24x3xbf16>
    %26 = vector.shape_cast %25 : vector<1x24x3xbf16> to vector<24x3xbf16>
    %cst_12 = arith.constant dense<0.000000e+00> : vector<24x256xf32>
    %27 = tpu.matmul %26, %19, %cst_12 {dimension_numbers = #tpu.dot_dimension_numbers<[1], [0], [0], [1], [0, 0, 1, 1], [], []>} : vector<24x3xbf16>, vector<3x256xbf16>, vector<24x256xf32> -> vector<24x256xf32>
    %28 = vector.extract_strided_slice %24 {offsets = [1, 0, 0], sizes = [1, 24, 3], strides = [1, 1, 1]} : vector<3x24x3xbf16> to vector<1x24x3xbf16>
    %29 = vector.shape_cast %28 : vector<1x24x3xbf16> to vector<24x3xbf16>
    %cst_13 = arith.constant dense<0.000000e+00> : vector<24x256xf32>
    %30 = tpu.matmul %29, %15, %cst_13 {dimension_numbers = #tpu.dot_dimension_numbers<[1], [0], [0], [1], [0, 0, 1, 1], [], []>} : vector<24x3xbf16>, vector<3x256xbf16>, vector<24x256xf32> -> vector<24x256xf32>
    %31 = arith.addf %27, %30 : vector<24x256xf32>
    %32 = vector.extract_strided_slice %24 {offsets = [2, 0, 0], sizes = [1, 24, 3], strides = [1, 1, 1]} : vector<3x24x3xbf16> to vector<1x24x3xbf16>
    %33 = vector.shape_cast %32 : vector<1x24x3xbf16> to vector<24x3xbf16>
    %cst_14 = arith.constant dense<0.000000e+00> : vector<24x256xf32>
    %34 = tpu.matmul %33, %23, %cst_14 {dimension_numbers = #tpu.dot_dimension_numbers<[1], [0], [0], [1], [0, 0, 1, 1], [], []>} : vector<24x3xbf16>, vector<3x256xbf16>, vector<24x256xf32> -> vector<24x256xf32>
    %35 = arith.addf %31, %34 : vector<24x256xf32>
    %36 = vector.extract_strided_slice %35 {offsets = [0, 0], sizes = [6, 256], strides = [1, 1]} : vector<24x256xf32> to vector<6x256xf32>
    %37 = vector.extract_strided_slice %35 {offsets = [8, 0], sizes = [6, 256], strides = [1, 1]} : vector<24x256xf32> to vector<6x256xf32>
    %38 = vector.extract_strided_slice %35 {offsets = [16, 0], sizes = [6, 256], strides = [1, 1]} : vector<24x256xf32> to vector<6x256xf32>
    %c1_i32 = arith.constant 1 : i32
    %39 = tpu.dynamic_rotate %36 by %c1_i32 dim 1 : vector<6x256xf32>, i32 -> vector<6x256xf32>
    %40 = vector.broadcast %13 : vector<1x256xf32> to vector<6x256xf32>
    %41 = arith.mulf %39, %40 : vector<6x256xf32>
    %42 = arith.addf %37, %41 : vector<6x256xf32>
    %c255_i32 = arith.constant 255 : i32
    %43 = tpu.dynamic_rotate %38 by %c255_i32 dim 1 : vector<6x256xf32>, i32 -> vector<6x256xf32>
    %44 = vector.broadcast %14 : vector<1x256xf32> to vector<6x256xf32>
    %45 = arith.mulf %43, %44 : vector<6x256xf32>
    %46 = arith.addf %42, %45 : vector<6x256xf32>
    %c0_15 = arith.constant 0 : index
    %c0_16 = arith.constant 0 : index
    %47 = vector.load %arg5[%c0_15, %c0_16] : memref<6x1xf32, #tpu.memory_space<vmem>>, vector<6x1xf32>
    %48 = vector.broadcast %47 : vector<6x1xf32> to vector<6x256xf32>
    %49 = arith.addf %46, %48 : vector<6x256xf32>
    %cst_17 = arith.constant 0.000000e+00 : f32
    %50 = vector.broadcast %cst_17 : f32 to vector<6x256xf32>
    %51 = arith.maximumf %49, %50 : vector<6x256xf32>
    %c0_18 = arith.constant 0 : index
    %c0_19 = arith.constant 0 : index
    %c0_20 = arith.constant 0 : index
    %52 = vector.load %arg7[%c0_18, %c0_19, %c0_20] : memref<1x6x256xf32, #tpu.memory_space<vmem>>, vector<1x6x256xf32>
    %53 = vector.shape_cast %52 : vector<1x6x256xf32> to vector<6x256xf32>
    %54 = vector.shape_cast %51 : vector<6x256xf32> to vector<1x6x256xf32>
    tpu.vector_store %arg7[%c0_18, %c0_19, %c0_20], %54 {strides = array<i32>} : memref<1x6x256xf32, #tpu.memory_space<vmem>>, vector<1x6x256xf32>,
    return
  }
  func.func @transform_0(%arg0: i32) -> (i32, i32, i32) {
    %c0_i32 = arith.constant 0 : i32
    %c0_i32_0 = arith.constant 0 : i32
    %c0_i32_1 = arith.constant 0 : i32
    return %arg0, %c0_i32, %c0_i32_0 : i32, i32, i32
  }
  func.func @transform_1(%arg0: i32) -> (i32, i32) {
    %c0_i32 = arith.constant 0 : i32
    %c0_i32_0 = arith.constant 0 : i32
    %c0_i32_1 = arith.constant 0 : i32
    return %c0_i32, %c0_i32_0 : i32, i32
  }
  func.func @transform_2(%arg0: i32) -> (i32, i32) {
    %c0_i32 = arith.constant 0 : i32
    %c0_i32_0 = arith.constant 0 : i32
    %c0_i32_1 = arith.constant 0 : i32
    return %c0_i32, %c0_i32_0 : i32, i32
  }
  func.func @transform_3(%arg0: i32) -> (i32, i32, i32) {
    %c0_i32 = arith.constant 0 : i32
    %c0_i32_0 = arith.constant 0 : i32
    %c0_i32_1 = arith.constant 0 : i32
    %c0_i32_2 = arith.constant 0 : i32
    return %c0_i32, %c0_i32_0, %c0_i32_1 : i32, i32, i32
  }
  func.func @transform_4(%arg0: i32) -> (i32, i32) {
    %c0_i32 = arith.constant 0 : i32
    %c0_i32_0 = arith.constant 0 : i32
    %c0_i32_1 = arith.constant 0 : i32
    return %c0_i32, %c0_i32_0 : i32, i32
  }
  func.func @transform_5(%arg0: i32) -> (i32, i32) {
    %c0_i32 = arith.constant 0 : i32
    %c0_i32_0 = arith.constant 0 : i32
    %c0_i32_1 = arith.constant 0 : i32
    return %c0_i32, %c0_i32_0 : i32, i32
  }
  func.func @transform_6(%arg0: i32) -> (i32, i32, i32) {
    %c0_i32 = arith.constant 0 : i32
    %c0_i32_0 = arith.constant 0 : i32
    %c0_i32_1 = arith.constant 0 : i32
    return %arg0, %c0_i32, %c0_i32_0 : i32, i32, i32
  }
}

</mosaic_0001>

<bundles_post_ra>
// kernel: fireblock_forward.1
= control target key start
LH: loop header
LB: loop body
LE: loop exit
PB: predicated region body
PF: predicated region fallthrough
CT: control target
= control target key end

     0   :  { %s840_s21 = smov 0   ;;  %s935_s0 = inlined_call_operand.vmem [shape: f32[2,4,256], index: 0, kind: input, shape index: {}]   ;;  %s936_s1 = inlined_call_operand.vmem [shape: bf16[3,4], index: 1, kind: input, shape index: {}]   ;;  %s937_s2 = inlined_call_operand.vmem [shape: f32[3,1], index: 2, kind: input, shape index: {}]   ;;  %s938_s3 = inlined_call_operand.vmem [shape: bf16[3,24,3], index: 3, kind: input, shape index: {}]   ;;  %s939_s4 = inlined_call_operand.vmem [shape: f32[6,1], index: 4, kind: input, shape index: {}]   ;;  %s940_s5 = inlined_call_operand.vmem [shape: f32[4,256], index: 5, kind: input, shape index: {}]   ;;  %s941_s6 = inlined_call_operand.vmem [shape: f32[2,6,256], index: 6, kind: output, shape index: {}]  }
   0x1 LB: > { %s741_s22 = sadd.s32 4294967295, %s797_s21   ;;  %p745_p0 = scmp.ge.s32.totalorder %s797_s21, 1  ;;  %s797_s21 = sphi %s840_s21, %s16_s21  }
   0x2   : > { %p212_p1 = scmp.lt.s32.totalorder %s797_s21, 3 }
   0x4   : > { %p213_p2 = pnand %p745_p0, %p212_p1 }
   0x5   : > { %p242_p3 = scmp.lt.s32.totalorder (!%p213_p2), %s741_s22, 1  ;;  %s801_s7 = smov (!%p213_p2), 16  }
   0x6   : > { %216 = sbr.rel (%p213_p2) target bundleno = 688 (0x2b0), region = 44  ;;  %s802_s8 = smov (!%p213_p2), 112  }
   0x7   : > { %s804_s26 = smov (!%p213_p2), 127  }
   0xb   : > { %v799_v0 = vmov 0   ;;  %v260_v1 = vld [vmem:[%s937_s2] sm:$0x7]  ;;  %s943_s22 = smov (!%p242_p3, %s741_s22), 1  ;;  %vm270_vm0 = vcmask 1041408   ;;  %vm266_vm1 = vcmask 31744   ;;  %v327_v26 = vlaneseq }
   0xc   : > { %309 = vmatprep.mubr.bf16.mxu0 %v799_v0  ;;  %782 = vset.pattern.permute.xlu0 %v799_v0  ;;  %s766_s25 = sshll.u32 %s943_s22, 3  ;;  %v259_v7 = vld [vmem:[%s936_s1] sm:$0x3]  ;;  %vm408_vm2 = vcmask 1040384   ;;  %v800_v14 = vmov 65535   ;;  %v785_v24 = vld [vmem:[%s938_s3 + $0xc] sm:$0xff]  }
   0xd   : > { %263 = vperm.xlu0 %782, %v260_v1   ;;  %449 = vmatprep.mubr.bf16.mxu1 %v799_v0  ;;  %s246_s28 = scalar_lea.vmem %s935_s0, %s766_s25  ;;  %v409_v15 = vsel %vm408_vm2, 4294967295, %v800_v14  ;;  %vm401_vm3 = vcmask 23552   ;;  %v786_v25 = vld [vmem:[%s938_s3 + $0x14] ss:$0 sps:$4 sm:$0xff]   ;;  %v878_v27 = vshrl.u32 %v327_v26, 7  ;;  %v885_v30 = vld [vmem:[%s940_s5] sm:$0xff] }
   0xe   : > { %783 = vset.pattern.permute.xlu1 %v799_v0  ;;  %v253_v2 = vld [vmem:[%s246_s28] sm:$0xff]  ;;  %v410_v20 = vsel %vm270_vm0, %v409_v15, 0  ;;  %v887_v31 = vand.u32 127, %v327_v26  ;;  %v788_v63 = vld [vmem:[%s938_s3 + $0x18] sm:$0xff]   ;;  %v789_v1 = vld [vmem:[%s938_s3 + $0x8] ss:$0 sps:$4 sm:$0xff]  }
   0xf   : > { %v255_v3 = vcombine.high %v253_v2, %v253_v2  ;;  %v257_v4 = vpack.c.bf16 %v253_v2, %v253_v2  ;;  %v335_v28 = vsub.s32 0, %v878_v27  ;;  %v339_v29 = vsub.s32 4, %v878_v27  ;;  %v787_v60 = vld [vmem:[%s938_s3] sm:$0xff]   ;;  %s803_s25 = smov 1   ;;  %s767_s29 = sshll.u32 %s943_s22, 4 }
  0x10   : > { %v364_v34 = vsub.s32 1, %v878_v27  ;;  %v368_v35 = vsub.s32 5, %v878_v27  ;;  %vm329_vm4 = vcmp.lt.s32.totalorder %v887_v31, 16  ;;  %vm359_vm5 = vcmp.lt.s32.totalorder %v887_v31, 112  ;;  %v790_v2 = vld [vmem:[%s938_s3 + $0x20] ss:$0 sps:$4 sm:$0xff]  }
  0x11   : > { %v258_v5 = vpack.c.bf16 %v255_v3, %v255_v3  ;;  %v272_v6 = vsel %vm270_vm0, %v257_v4, 0  ;;  %v336_v32 = vrot.slane %v885_v30, %v335_v28  ;;  %v340_v33 = vrot.slane %v885_v30, %v339_v29 }
  0x12   : > { %v365_v39 = vrot.slane %v885_v30, %v364_v34  ;;  %v369_v40 = vrot.slane %v885_v30, %v368_v35  ;;  %vm620_vm6 = vcmp.lt.s32.totalorder %v887_v31, 1  ;;  %vm649_vm7 = vcmp.lt.s32.totalorder %v887_v31, 127 }
  0x13   : > { %750 = vmatprep.subr.msk.bf16.mxu0 %vm270_vm0, %v258_v5  ;;  %v346_v37 = vrot.slane %v336_v32, %v335_v28  ;;  %v350_v38 = vrot.slane %v340_v33, %v335_v28 }
  0x14   : > { %292 = vmatpush1.bf16.msra.mxu0 %v272_v6  ;;  %v375_v46 = vrot.slane %v365_v39, %v364_v34  ;;  %v379_v47 = vrot.slane %v369_v40, %v364_v34  ;;  %v674_v39 = vld [vmem:[%s939_s4] sm:$0x3f] }
  0x17   : > { %751 = vmatmul.mubr.msk.bf16.vlgmr.msra.gmra.mxu0 %vm266_vm1, %v259_v7 }
  0x18   : > { %520 = vmatprep.mubr.bf16.mxu0 %v799_v0 }
  0x88   : > { %v264_v8 = vpop.permute.xlu0 %263 }
  0xd7   : > { %v311_v9 = vpop.f32.mrf.mxu0 }
  0xd8   : > { %v312_v10 = vadd.f32 %v311_v9, %v264_v8 }
  0xd9   : > { %v313_v11 = vpop.f32.mrf.mxu0 }
  0xda   : > { %v318_v12 = vmax.f32 %v312_v10, 0.0  ;;  %v314_v13 = vadd.f32 %v313_v11, %v264_v8 }
  0xdb   : > { %v315_v16 = vpop.f32.mrf.mxu0 }
  0xdc   : > { %v319_v17 = vmax.f32 %v314_v13, 0.0  ;;  %323 = vrot.lane.b32.xlu0 %v318_v12, %s801_s7  ;;  %v321_v19 = vpack.c.bf16 %v318_v12, %v318_v12 }
  0xdd   : > { %v316_v18 = vpop.f32.mrf.mxu0 }
  0xde   : > { %325 = vrot.lane.b32.xlu1 %v319_v17, %s801_s7  ;;  %v322_v21 = vpack.c.bf16 %v319_v17, %v319_v17  ;;  %v412_v23 = vand.u32 %v410_v20, %v321_v19 }
  0xe0   : > { %357 = vrot.lane.b32.xlu0 %v319_v17, %s802_s8  ;;  %v415_v22 = vand.u32 %v410_v20, %v322_v21 }
  0xe2   : > { %431 = vmatprep.subr.bf16.mxu1 %v415_v22  ;;  %355 = vrot.lane.b32.xlu1 %v318_v12, %s802_s8  ;;  %s251_s8 = scalar_lea.vmem %s941_s6, %s767_s29 }
  0xe3   : > { %432 = vmatpush1.bf16.msra.mxu1 %v412_v23 }
  0xe6   : > { %754 = vmatmul.mubr.msk.bf16.vlgmr.msra.gmra.mxu1 %vm401_vm3, %v785_v24 }
  0xe7   : > { %459 = vmatprep.mubr.bf16.mxu1 %v799_v0 }
  0xee   : > { %755 = vmatmul.mubr.msk.bf16.gmra.mxu1 %vm401_vm3, %v786_v25 }
  0xef   : > { %591 = vmatprep.mubr.bf16.mxu1 %v799_v0 }
 0x14e   : > { %v324_v36 = vpop.permute.xlu0 %323 }
 0x150   : > { %v326_v41 = vpop.permute.xlu1 %325 }
 0x151   : > { %v330_v42 = vsel %vm329_vm4, %v324_v36, %v326_v41  ;;  %v331_v43 = vsel %vm329_vm4, %v326_v41, %v324_v36 }
 0x152   : > { %v351_v44 = vmul.f32 %v346_v37, %v331_v43  ;;  %v352_v45 = vmul.f32 %v350_v38, %v330_v42  ;;  %v358_v50 = vpop.permute.xlu0 %357  ;;  %v625_v42 = vsub.s32 2, %v878_v27  ;;  %v629_v43 = vsub.s32 6, %v878_v27 }
 0x154   : > { %v353_v48 = vpack.c.bf16 %v351_v44, %v351_v44  ;;  %v354_v49 = vpack.c.bf16 %v352_v45, %v352_v45  ;;  %v356_v51 = vpop.permute.xlu1 %355  ;;  %v654_v44 = vsub.s32 3, %v878_v27  ;;  %v658_v45 = vsub.s32 7, %v878_v27 }
 0x155   : > { %v360_v52 = vsel %vm359_vm5, %v356_v51, %v358_v50  ;;  %v361_v53 = vsel %vm359_vm5, %v358_v50, %v356_v51 }
 0x156   : > { %v483_v54 = vand.u32 %v410_v20, %v353_v48  ;;  %v380_v55 = vmul.f32 %v375_v46, %v360_v52  ;;  %v381_v56 = vmul.f32 %v379_v47, %v361_v53  ;;  %v486_v57 = vand.u32 %v410_v20, %v354_v49 }
 0x157   : > { %v626_v46 = vrot.slane %v885_v30, %v625_v42  ;;  %v630_v47 = vrot.slane %v885_v30, %v629_v43  ;;  %v655_v50 = vrot.slane %v885_v30, %v654_v44  ;;  %v659_v51 = vrot.slane %v885_v30, %v658_v45 }
 0x158   : > { %v382_v58 = vpack.c.bf16 %v380_v55, %v380_v55  ;;  %v383_v59 = vpack.c.bf16 %v381_v56, %v381_v56  ;;  %502 = vmatprep.subr.bf16.mxu0 %v486_v57 }
 0x159   : > { %503 = vmatpush1.bf16.msra.mxu0 %v483_v54  ;;  %v636_v52 = vrot.slane %v626_v46, %v625_v42  ;;  %v640_v53 = vrot.slane %v630_v47, %v625_v42  ;;  %v665_v57 = vrot.slane %v655_v50, %v654_v44 }
 0x15a   : > { %v554_v61 = vand.u32 %v410_v20, %v382_v58  ;;  %v557_v62 = vand.u32 %v410_v20, %v383_v59  ;;  %v669_v58 = vrot.slane %v659_v51, %v654_v44 }
 0x15c   : > { %758 = vmatmul.mubr.msk.bf16.vlgmr.msra.gmra.mxu0 %vm401_vm3, %v787_v60  ;;  %573 = vmatprep.subr.bf16.mxu1 %v557_v62 }
 0x15d   : > { %574 = vmatpush1.bf16.msra.mxu1 %v554_v61  ;;  %530 = vmatprep.mubr.bf16.mxu0 %v799_v0 }
 0x160   : > { %762 = vmatmul.mubr.msk.bf16.vlgmr.msra.gmra.mxu1 %vm401_vm3, %v788_v63 }
 0x161   : > { %601 = vmatprep.mubr.bf16.mxu1 %v799_v0 }
 0x164   : > { %759 = vmatmul.mubr.msk.bf16.gmra.mxu0 %vm401_vm3, %v789_v1 }
 0x168   : > { %763 = vmatmul.mubr.msk.bf16.gmra.mxu1 %vm401_vm3, %v790_v2 }
 0x1a6   : > { %v451_v3 = vpop.f32.mrf.mxu1 }
 0x1a8   : > { %v453_v4 = vpop.f32.mrf.mxu1 }
 0x1aa   : > { %v455_v5 = vpop.f32.mrf.mxu1 }
 0x1ac   : > { %v457_v6 = vpop.f32.mrf.mxu1 }
 0x1ae   : > { %v461_v7 = vpop.f32.mrf.mxu1 }
 0x1b0   : > { %v463_v8 = vpop.f32.mrf.mxu1 }
 0x1b2   : > { %v465_v9 = vpop.f32.mrf.mxu1 }
 0x1b4   : > { %v466_v10 = vpop.f32.mrf.mxu1 }
 0x21c   : > { %v522_v11 = vpop.f32.mrf.mxu0 }
 0x21d   : > { %v523_v13 = vadd.f32 %v522_v11, %v451_v3 }
 0x21e   : > { %v524_v12 = vpop.f32.mrf.mxu0 }
 0x21f   : > { %v525_v15 = vadd.f32 %v524_v12, %v453_v4 }
 0x220   : > { %v526_v0 = vpop.f32.mrf.mxu0  ;;  %v593_v14 = vpop.f32.mrf.mxu1 }
 0x221   : > { %v610_v16 = vadd.f32 %v593_v14, %v523_v13  ;;  %v527_v19 = vadd.f32 %v526_v0, %v455_v5 }
 0x222   : > { %v528_v17 = vpop.f32.mrf.mxu0  ;;  %v595_v18 = vpop.f32.mrf.mxu1 }
 0x223   : > { %v611_v20 = vadd.f32 %v595_v18, %v525_v15  ;;  %616 = vrot.lane.b32.xlu1 %v610_v16, %s803_s25  ;;  %v529_v23 = vadd.f32 %v528_v17, %v457_v6 }
 0x224   : > { %v532_v21 = vpop.f32.mrf.mxu0  ;;  %v597_v22 = vpop.f32.mrf.mxu1 }
 0x225   : > { %v612_v24 = vadd.f32 %v597_v22, %v527_v19  ;;  %618 = vrot.lane.b32.xlu0 %v611_v20, %s803_s25  ;;  %v533_v28 = vadd.f32 %v532_v21, %v461_v7 }
 0x226   : > { %v534_v25 = vpop.f32.mrf.mxu0  ;;  %v599_v26 = vpop.f32.mrf.mxu1 }
 0x227   : > { %v613_v29 = vadd.f32 %v599_v26, %v529_v23  ;;  %v535_v34 = vadd.f32 %v534_v25, %v463_v8 }
 0x228   : > { %v603_v32 = vpop.f32.mrf.mxu1  ;;  %v536_v33 = vpop.f32.mrf.mxu0 }
 0x229   : > { %v614_v35 = vadd.f32 %v603_v32, %v533_v28 }
 0x22a   : > { %v605_v36 = vpop.f32.mrf.mxu1  ;;  %v537_v37 = vpop.f32.mrf.mxu0 }
 0x22b   : > { %v615_v38 = vadd.f32 %v605_v36, %v535_v34  ;;  %645 = vrot.lane.b32.xlu1 %v614_v35, %s804_s26 }
 0x22c   : > { %v607_v40 = vpop.f32.mrf.mxu1 }
 0x22d   : > { %647 = vrot.lane.b32.xlu0 %v615_v38, %s804_s26 }
 0x22e   : > { %v608_v41 = vpop.f32.mrf.mxu1 }
 0x22f   : > { %677 = vperm.xlu1 %783, %v674_v39  }
 0x295   : > { %v617_v49 = vpop.permute.xlu1 %616 }
 0x297   : > { %v619_v48 = vpop.permute.xlu0 %618 }
 0x298   : > { %v621_v55 = vsel %vm620_vm6, %v617_v49, %v619_v48  ;;  %v622_v27 = vsel %vm620_vm6, %v619_v48, %v617_v49 }
 0x299   : > { %v641_v61 = vmul.f32 %v636_v52, %v622_v27  ;;  %v642_v62 = vmul.f32 %v640_v53, %v621_v55 }
 0x29b   : > { %v643_v2 = vadd.f32 %v641_v61, %v612_v24  ;;  %v644_v3 = vadd.f32 %v642_v62, %v613_v29 }
 0x29d   : > { %v646_v56 = vpop.permute.xlu1 %645 }
 0x29f   : > { %v648_v54 = vpop.permute.xlu0 %647 }
 0x2a0   : > { %v650_v59 = vsel %vm649_vm7, %v646_v56, %v648_v54  ;;  %v651_v60 = vsel %vm649_vm7, %v648_v54, %v646_v56 }
 0x2a1   : > { %v670_v63 = vmul.f32 %v665_v57, %v650_v59  ;;  %v671_v1 = vmul.f32 %v669_v58, %v651_v60 }
 0x2a3   : > { %v672_v30 = vadd.f32 %v670_v63, %v643_v2  ;;  %v673_v4 = vadd.f32 %v671_v1, %v644_v3 }
 0x2aa   : > { %v678_v5 = vpop.permute.xlu1 %677 }
 0x2ab   : > { %v680_v6 = vadd.f32 %v678_v5, %v672_v30  ;;  %v681_v31 = vadd.f32 %v678_v5, %v673_v4 }
 0x2ad   : > { %v682_v7 = vmax.f32 %v680_v6, 0.0  ;;  %v683_v8 = vmax.f32 %v681_v31, 0.0 }
 0x2af   : > { %684 = vst [vmem:[%s251_s8] sm:$0x3f] %v682_v7  ;;  %685 = vst [vmem:[%s251_s8 + $0x8] sm:$0x3f] %v683_v8 }
 0x2b0 PF: > { %s16_s21 = sadd.s32 1, %s797_s21  }
 0x2b1   : > { %p13_p4 = scmp.ge.s32.totalorder %s16_s21, 4  }
 0x2b3   :  { %15 = sbr.rel (!%p13_p4) target bundleno = 1 (0x1), region = 74 }

</bundles_post_ra>
